<compile_context>
chip_gen: v7x
topology: tpu7x:2x2x1
jax: 0.10.0
libtpu: 0.0.40
codegen_flags: <defaults>
</compile_context>

<pallas_src>
import numpy as np
import jax
import jax.numpy as jnp
from jax.experimental import pallas as pl
from jax.experimental.pallas import tpu as pltpu


# ----------------------------------------------------------------------------
# Exact PyTorch AdaptiveAvgPool2d / bilinear-upsample (align_corners=False)
# operators as small dense 1-D factor matrices (built once on host).
# ----------------------------------------------------------------------------
def adaptive_pool_matrix(in_size, out_size):
    """P[out, in]: PyTorch AdaptiveAvgPool1d bin averaging."""
    P = np.zeros((out_size, in_size), dtype=np.float32)
    for i in range(out_size):
        start = (i * in_size) // out_size
        end = -(-((i + 1) * in_size) // out_size)  # ceil div
        P[i, start:end] = 1.0 / (end - start)
    return P


def bilinear_upsample_matrix(in_size, out_size):
    """U[out, in]: PyTorch bilinear interpolate, align_corners=False."""
    U = np.zeros((out_size, in_size), dtype=np.float32)
    scale = in_size / out_size
    for i in range(out_size):
        src = (i + 0.5) * scale - 0.5
        if src < 0.0:
            src = 0.0
        i0 = int(np.floor(src))
        i1 = min(i0 + 1, in_size - 1)
        l1 = src - i0
        U[i, i0] += 1.0 - l1
        U[i, i1] += l1
    return U


# ----------------------------------------------------------------------------
# Pallas kernel. Per image:
#   acc    = wlast_aug @ x_aug                       (identity branch + bias)
#   pooled = x_aug @ ppt_all                         (ALL stage pools, 1 matmul)
#   z      = sum_s mask_s * (wc_aug[s] @ pooled)     (tiny block-diag channel mixes)
#   acc   += z @ uut_all                             (ALL stage upsamples, 1 matmul)
#   out    = relu(acc)                               (lane-dense (O, HW) store)
# All accumulation in f32.
# ----------------------------------------------------------------------------
def _make_psp_kernel(stage_sizes, n_per_step, o_dim):
    p2 = [p * p for p in stage_sizes]
    offs = [0]
    for v in p2[:-1]:
        offs.append(offs[-1] + v)
    PT = int(sum(p2))
    S = len(stage_sizes)

    def psp_kernel(x_ref, ppt_ref, uut_ref, wc_ref, wlast_ref, o_ref):
        # Static per-stage column masks over the merged pooled axis (VPU-only).
        col = jax.lax.broadcasted_iota(jnp.int32, (o_dim, PT), 1)
        masks = [(col >= offs[s]) & (col < offs[s] + p2[s]) for s in range(S)]

        # Hoist grid-invariant weight loads out of the per-image loop.
        ppt = ppt_ref[...]                      # (HW, PT)
        uut = uut_ref[...]                      # (PT, HW)
        wlast = wlast_ref[...]                  # (O, C+1), bias in last column
        wcs = [wc_ref[s] for s in range(S)]     # each (O, C+1), zero last column

        for b in range(n_per_step):             # static, tiny (1 or N)
            x = x_ref[b]                         # (C+1, HW); last row is ones
            # identity branch of the concat + folded bias
            acc = jnp.dot(wlast, x, preferred_element_type=jnp.float32)   # (O, HW)
            # merged adaptive average pools of every stage: one MXU pass
            pooled = jnp.dot(x, ppt, preferred_element_type=jnp.float32)  # (C+1, PT)
            # per-stage 1x1 conv folded with bottleneck slice, block-diag via masks
            z = None
            for s in range(S):
                zs = jnp.dot(wcs[s], pooled, preferred_element_type=jnp.float32)
                zs = jnp.where(masks[s], zs, 0.0)
                z = zs if z is None else z + zs                           # (O, PT)
            # merged bilinear upsamples of every stage: one MXU pass
            acc = acc + jnp.dot(z, uut, preferred_element_type=jnp.float32)
            o_ref[b] = jnp.maximum(acc, 0.0).astype(o_ref.dtype)          # ReLU

    return psp_kernel


def _num_grid_steps(n):
    """2 parallel steps on 2-TC v7x, 1 step (whole batch fused) on v5e/v6e."""
    try:
        kind = jax.devices()[0].device_kind.lower()
    except Exception:
        kind = ""
    n_tc = 2 if "v7" in kind else 1   # v7x: 2 TensorCores/chip; v5e/v6e: 1
    # TODO(synk): for v7x with N==1 or odd N, split the HW axis into a parallel
    # grid dim instead so the second TensorCore is not idle.
    if n_tc > 1 and n % n_tc == 0:
        return n_tc
    return 1


def psp_forward(x, ppt_all, uut_all, wc_aug, wlast_aug, stage_sizes,
                single_buffer_weights=True):
    """x: (N, C, H, W). Returns (N, O, H, W) in x.dtype."""
    N, C, H, W = x.shape
    HW = H * W
    C1 = C + 1
    O = wlast_aug.shape[0]
    S = wc_aug.shape[0]
    PT = ppt_all.shape[1]

    steps = _num_grid_steps(N)
    npb = N // steps                        # images per grid step

    # Bias fold: ones row appended to x (bias column already in wlast_aug).
    xf = x.reshape(N, C, HW)
    x_aug = jnp.concatenate([xf, jnp.ones((N, 1, HW), xf.dtype)], axis=1)

    def wspec(shape):
        idx = lambda b: (0,) * len(shape)
        if single_buffer_weights:
            # constant index_map -> never re-DMA'd; second buffer is pure waste
            return pl.BlockSpec(shape, idx, pipeline_mode=pl.Buffered(1))
        return pl.BlockSpec(shape, idx)

    out = pl.pallas_call(
        _make_psp_kernel(tuple(stage_sizes), npb, O),
        out_shape=jax.ShapeDtypeStruct((N, O, HW), x.dtype),
        grid=(steps,),
        in_specs=[
            pl.BlockSpec((npb, C1, HW), lambda b: (b, 0, 0)),   # x (+ones row)
            wspec((HW, PT)),                                    # merged pool factor
            wspec((PT, HW)),                                    # merged upsample factor
            wspec((S, O, C1)),                                  # fused stage mixes
            wspec((O, C1)),                                     # identity W + bias col
        ],
        out_specs=pl.BlockSpec((npb, O, HW), lambda b: (b, 0, 0)),
        compiler_params=pltpu.CompilerParams(
            dimension_semantics=("parallel",)),
    )(x_aug, ppt_all, uut_all, wc_aug, wlast_aug)
    return out.reshape(N, O, H, W)


# ----------------------------------------------------------------------------
# Pure-JAX reference following the literal PyTorch op order
# (pool -> 1x1 conv -> bilinear upsample -> concat -> 1x1 conv -> relu).
# ----------------------------------------------------------------------------
def psp_reference(x, pool_mats, up_mats, conv_ws, w_b, b):
    priors = []
    for (Ph, Pw), (Uh, Uw), wcv in zip(pool_mats, up_mats, conv_ws):
        pooled = jnp.einsum('sh,nchw->ncsw', Ph, x)
        pooled = jnp.einsum('ncsw,tw->ncst', pooled, Pw)
        z = jnp.einsum('oc,ncst->nost', wcv, pooled)      # stage 1x1 conv (no bias)
        up = jnp.einsum('hs,nost->noht', Uh, z)
        up = jnp.einsum('wt,noht->nohw', Uw, up)          # bilinear upsample
        priors.append(up)
    priors.append(x)
    cat = jnp.concatenate(priors, axis=1)
    out = jnp.einsum('ok,nkhw->nohw', w_b, cat) + b[None, :, None, None]
    return jnp.maximum(out, 0.0)


if __name__ == "__main__":
    # Small shapes consistent with the module: features=4, out_features=8.
    N, C, O, H, W = 2, 4, 8, 16, 16
    sizes = (1, 3, 6)
    S = len(sizes)
    HW = H * W
    PT = sum(p * p for p in sizes)  # 46 merged pooled columns (un-padded)

    key = jax.random.PRNGKey(0)
    kx, kc, kb, kbias = jax.random.split(key, 4)
    x = jax.random.normal(kx, (N, C, H, W), jnp.float32)

    # Deterministic synthetic parameters (shapes from PSP_1.__init__).
    conv_keys = jax.random.split(kc, S)
    conv_ws = [jax.random.normal(k, (C, C), jnp.float32) * 0.2 for k in conv_keys]
    w_b = jax.random.normal(kb, (O, C * (S + 1)), jnp.float32) * 0.1   # bottleneck 1x1
    b = jax.random.normal(kbias, (O,), jnp.float32) * 0.1              # bottleneck bias

    # Precompute merged (un-padded) low-rank spatial factors.
    pool_mats, up_mats = [], []
    ppt_blocks, uut_blocks = [], []
    for p in sizes:
        Ph = adaptive_pool_matrix(H, p)          # (p, H)
        Pw = adaptive_pool_matrix(W, p)          # (p, W)
        Uh = bilinear_upsample_matrix(p, H)      # (H, p)
        Uw = bilinear_upsample_matrix(p, W)      # (W, p)
        pool_mats.append((jnp.asarray(Ph), jnp.asarray(Pw)))
        up_mats.append((jnp.asarray(Uh), jnp.asarray(Uw)))
        PP = np.kron(Ph, Pw)                     # (p*p, HW): pooled = PP @ x_flat
        UU = np.kron(Uh, Uw)                     # (HW, p*p): up     = UU @ z_flat
        ppt_blocks.append(PP.T)                  # (HW, p*p)
        uut_blocks.append(UU.T)                  # (p*p, HW)
    ppt_all = jnp.asarray(np.concatenate(ppt_blocks, axis=1))   # (HW, PT)
    uut_all = jnp.asarray(np.concatenate(uut_blocks, axis=0))   # (PT, HW)

    # Fold bottleneck channel slices with stage 1x1 convs; append a zero column
    # so the augmented ones-row of x contributes nothing to the pyramid path.
    # (Host-side fold reassociates f32 sums; fine at C=4.)
    wc_list = []
    for i in range(S):
        wc = np.asarray(w_b[:, i * C:(i + 1) * C] @ conv_ws[i])          # (O, C)
        wc_list.append(np.concatenate([wc, np.zeros((O, 1), np.float32)], axis=1))
    wc_aug = jnp.asarray(np.stack(wc_list))                              # (S, O, C+1)

    # Identity-branch weight with the bias folded in as an extra column.
    w_last = np.asarray(w_b[:, S * C:(S + 1) * C])                       # (O, C)
    wlast_aug = jnp.asarray(
        np.concatenate([w_last, np.asarray(b).reshape(O, 1)], axis=1))   # (O, C+1)

    # Reference (literal PyTorch op order), f32.
    ref = np.asarray(psp_reference(x, pool_mats, up_mats, conv_ws, w_b, b))

    # f32 end-to-end run (review: bf16 buys nothing at these sizes).
    try:
        out = psp_forward(x, ppt_all, uut_all, wc_aug, wlast_aug, sizes,
                          single_buffer_weights=True)
        out = jax.block_until_ready(out)
    except Exception:
        # Fallback in case this runtime rejects Buffered(1) single-buffering.
        out = psp_forward(x, ppt_all, uut_all, wc_aug, wlast_aug, sizes,
                          single_buffer_weights=False)
        out = jax.block_until_ready(out)

    np.testing.assert_allclose(np.asarray(out), ref, rtol=1e-4, atol=1e-4)
    print("KERNEL_OK")
</pallas_src>

<mosaic_0001>
module attributes {stable_mosaic.version = 11 : i64} {
  func.func @psp_kernel(%arg0: i32, %arg1: memref<2x5x256xf32, #tpu.memory_space<vmem>>, %arg2: memref<256x46xf32, #tpu.memory_space<vmem>>, %arg3: memref<46x256xf32, #tpu.memory_space<vmem>>, %arg4: memref<3x8x5xf32, #tpu.memory_space<vmem>>, %arg5: memref<8x5xf32, #tpu.memory_space<vmem>>, %arg6: memref<2x8x256xf32, #tpu.memory_space<vmem>>) attributes {dimension_semantics = [#tpu.dimension_semantics<parallel>], iteration_bounds = array<i64: 1>, scalar_prefetch = 0 : i64, scratch_operands = 0 : i64, tpu.core_type = #tpu.core_type<tc>, window_params = [{transform_indices = @transform_0, window_bounds = array<i64: 2, 5, 256>}, {pipeline_mode = #tpu.pipeline_mode<synchronous>, transform_indices = @transform_1, window_bounds = array<i64: 256, 46>}, {pipeline_mode = #tpu.pipeline_mode<synchronous>, transform_indices = @transform_2, window_bounds = array<i64: 46, 256>}, {pipeline_mode = #tpu.pipeline_mode<synchronous>, transform_indices = @transform_3, window_bounds = array<i64: 3, 8, 5>}, {pipeline_mode = #tpu.pipeline_mode<synchronous>, transform_indices = @transform_4, window_bounds = array<i64: 8, 5>}, {transform_indices = @transform_5, window_bounds = array<i64: 2, 8, 256>}]} {
    %0 = tpu.iota {dimensions = array<i32: 1>} : vector<8x46xi32>
    %c0_i32 = arith.constant 0 : i32
    %1 = vector.broadcast %c0_i32 : i32 to vector<8x46xi32>
    %2 = arith.cmpi sge, %0, %1 : vector<8x46xi32>
    %c1_i32 = arith.constant 1 : i32
    %3 = vector.broadcast %c1_i32 : i32 to vector<8x46xi32>
    %4 = arith.cmpi slt, %0, %3 : vector<8x46xi32>
    %5 = arith.andi %2, %4 : vector<8x46xi1>
    %c1_i32_0 = arith.constant 1 : i32
    %6 = vector.broadcast %c1_i32_0 : i32 to vector<8x46xi32>
    %7 = arith.cmpi sge, %0, %6 : vector<8x46xi32>
    %c10_i32 = arith.constant 10 : i32
    %8 = vector.broadcast %c10_i32 : i32 to vector<8x46xi32>
    %9 = arith.cmpi slt, %0, %8 : vector<8x46xi32>
    %10 = arith.andi %7, %9 : vector<8x46xi1>
    %c10_i32_1 = arith.constant 10 : i32
    %11 = vector.broadcast %c10_i32_1 : i32 to vector<8x46xi32>
    %12 = arith.cmpi sge, %0, %11 : vector<8x46xi32>
    %c46_i32 = arith.constant 46 : i32
    %13 = vector.broadcast %c46_i32 : i32 to vector<8x46xi32>
    %14 = arith.cmpi slt, %0, %13 : vector<8x46xi32>
    %15 = arith.andi %12, %14 : vector<8x46xi1>
    %c0 = arith.constant 0 : index
    %c0_2 = arith.constant 0 : index
    %16 = vector.load %arg2[%c0, %c0_2] : memref<256x46xf32, #tpu.memory_space<vmem>>, vector<256x46xf32>
    %c0_3 = arith.constant 0 : index
    %c0_4 = arith.constant 0 : index
    %17 = vector.load %arg3[%c0_3, %c0_4] : memref<46x256xf32, #tpu.memory_space<vmem>>, vector<46x256xf32>
    %c0_5 = arith.constant 0 : index
    %c0_6 = arith.constant 0 : index
    %18 = vector.load %arg5[%c0_5, %c0_6] : memref<8x5xf32, #tpu.memory_space<vmem>>, vector<8x5xf32>
    %c0_7 = arith.constant 0 : index
    %c0_8 = arith.constant 0 : index
    %c0_9 = arith.constant 0 : index
    %19 = vector.load %arg4[%c0_7, %c0_8, %c0_9] : memref<3x8x5xf32, #tpu.memory_space<vmem>>, vector<1x8x5xf32>
    %20 = vector.shape_cast %19 : vector<1x8x5xf32> to vector<8x5xf32>
    %c1 = arith.constant 1 : index
    %c0_10 = arith.constant 0 : index
    %c0_11 = arith.constant 0 : index
    %21 = vector.load %arg4[%c1, %c0_10, %c0_11] : memref<3x8x5xf32, #tpu.memory_space<vmem>>, vector<1x8x5xf32>
    %22 = vector.shape_cast %21 : vector<1x8x5xf32> to vector<8x5xf32>
    %c2 = arith.constant 2 : index
    %c0_12 = arith.constant 0 : index
    %c0_13 = arith.constant 0 : index
    %23 = vector.load %arg4[%c2, %c0_12, %c0_13] : memref<3x8x5xf32, #tpu.memory_space<vmem>>, vector<1x8x5xf32>
    %24 = vector.shape_cast %23 : vector<1x8x5xf32> to vector<8x5xf32>
    %c0_14 = arith.constant 0 : index
    %c0_15 = arith.constant 0 : index
    %c0_16 = arith.constant 0 : index
    %25 = vector.load %arg1[%c0_14, %c0_15, %c0_16] : memref<2x5x256xf32, #tpu.memory_space<vmem>>, vector<1x5x256xf32>
    %26 = vector.shape_cast %25 : vector<1x5x256xf32> to vector<5x256xf32>
    %cst = arith.constant dense<0.000000e+00> : vector<8x256xf32>
    %27 = tpu.matmul %18, %26, %cst {dimension_numbers = #tpu.dot_dimension_numbers<[1], [0], [0], [1], [0, 0, 1, 1], [], []>} : vector<8x5xf32>, vector<5x256xf32>, vector<8x256xf32> -> vector<8x256xf32>
    %cst_17 = arith.constant dense<0.000000e+00> : vector<5x46xf32>
    %28 = tpu.matmul %26, %16, %cst_17 {dimension_numbers = #tpu.dot_dimension_numbers<[1], [0], [0], [1], [0, 0, 1, 1], [], []>} : vector<5x256xf32>, vector<256x46xf32>, vector<5x46xf32> -> vector<5x46xf32>
    %cst_18 = arith.constant dense<0.000000e+00> : vector<8x46xf32>
    %29 = tpu.matmul %20, %28, %cst_18 {dimension_numbers = #tpu.dot_dimension_numbers<[1], [0], [0], [1], [0, 0, 1, 1], [], []>} : vector<8x5xf32>, vector<5x46xf32>, vector<8x46xf32> -> vector<8x46xf32>
    %cst_19 = arith.constant 0.000000e+00 : f32
    %30 = vector.broadcast %cst_19 : f32 to vector<8x46xf32>
    %31 = arith.select %5, %29, %30 : vector<8x46xi1>, vector<8x46xf32>
    %cst_20 = arith.constant dense<0.000000e+00> : vector<8x46xf32>
    %32 = tpu.matmul %22, %28, %cst_20 {dimension_numbers = #tpu.dot_dimension_numbers<[1], [0], [0], [1], [0, 0, 1, 1], [], []>} : vector<8x5xf32>, vector<5x46xf32>, vector<8x46xf32> -> vector<8x46xf32>
    %cst_21 = arith.constant 0.000000e+00 : f32
    %33 = vector.broadcast %cst_21 : f32 to vector<8x46xf32>
    %34 = arith.select %10, %32, %33 : vector<8x46xi1>, vector<8x46xf32>
    %35 = arith.addf %31, %34 : vector<8x46xf32>
    %cst_22 = arith.constant dense<0.000000e+00> : vector<8x46xf32>
    %36 = tpu.matmul %24, %28, %cst_22 {dimension_numbers = #tpu.dot_dimension_numbers<[1], [0], [0], [1], [0, 0, 1, 1], [], []>} : vector<8x5xf32>, vector<5x46xf32>, vector<8x46xf32> -> vector<8x46xf32>
    %cst_23 = arith.constant 0.000000e+00 : f32
    %37 = vector.broadcast %cst_23 : f32 to vector<8x46xf32>
    %38 = arith.select %15, %36, %37 : vector<8x46xi1>, vector<8x46xf32>
    %39 = arith.addf %35, %38 : vector<8x46xf32>
    %cst_24 = arith.constant dense<0.000000e+00> : vector<8x256xf32>
    %40 = tpu.matmul %39, %17, %cst_24 {dimension_numbers = #tpu.dot_dimension_numbers<[1], [0], [0], [1], [0, 0, 1, 1], [], []>} : vector<8x46xf32>, vector<46x256xf32>, vector<8x256xf32> -> vector<8x256xf32>
    %41 = arith.addf %27, %40 : vector<8x256xf32>
    %cst_25 = arith.constant 0.000000e+00 : f32
    %42 = vector.broadcast %cst_25 : f32 to vector<8x256xf32>
    %43 = arith.maximumf %41, %42 : vector<8x256xf32>
    %c0_26 = arith.constant 0 : index
    %c0_27 = arith.constant 0 : index
    %c0_28 = arith.constant 0 : index
    %44 = vector.load %arg6[%c0_26, %c0_27, %c0_28] : memref<2x8x256xf32, #tpu.memory_space<vmem>>, vector<1x8x256xf32>
    %45 = vector.shape_cast %44 : vector<1x8x256xf32> to vector<8x256xf32>
    %46 = vector.shape_cast %43 : vector<8x256xf32> to vector<1x8x256xf32>
    tpu.vector_store %arg6[%c0_26, %c0_27, %c0_28], %46 {strides = array<i32>} : memref<2x8x256xf32, #tpu.memory_space<vmem>>, vector<1x8x256xf32>,
    %c1_29 = arith.constant 1 : index
    %c0_30 = arith.constant 0 : index
    %c0_31 = arith.constant 0 : index
    %47 = vector.load %arg1[%c1_29, %c0_30, %c0_31] : memref<2x5x256xf32, #tpu.memory_space<vmem>>, vector<1x5x256xf32>
    %48 = vector.shape_cast %47 : vector<1x5x256xf32> to vector<5x256xf32>
    %cst_32 = arith.constant dense<0.000000e+00> : vector<8x256xf32>
    %49 = tpu.matmul %18, %48, %cst_32 {dimension_numbers = #tpu.dot_dimension_numbers<[1], [0], [0], [1], [0, 0, 1, 1], [], []>} : vector<8x5xf32>, vector<5x256xf32>, vector<8x256xf32> -> vector<8x256xf32>
    %cst_33 = arith.constant dense<0.000000e+00> : vector<5x46xf32>
    %50 = tpu.matmul %48, %16, %cst_33 {dimension_numbers = #tpu.dot_dimension_numbers<[1], [0], [0], [1], [0, 0, 1, 1], [], []>} : vector<5x256xf32>, vector<256x46xf32>, vector<5x46xf32> -> vector<5x46xf32>
    %cst_34 = arith.constant dense<0.000000e+00> : vector<8x46xf32>
    %51 = tpu.matmul %20, %50, %cst_34 {dimension_numbers = #tpu.dot_dimension_numbers<[1], [0], [0], [1], [0, 0, 1, 1], [], []>} : vector<8x5xf32>, vector<5x46xf32>, vector<8x46xf32> -> vector<8x46xf32>
    %cst_35 = arith.constant 0.000000e+00 : f32
    %52 = vector.broadcast %cst_35 : f32 to vector<8x46xf32>
    %53 = arith.select %5, %51, %52 : vector<8x46xi1>, vector<8x46xf32>
    %cst_36 = arith.constant dense<0.000000e+00> : vector<8x46xf32>
    %54 = tpu.matmul %22, %50, %cst_36 {dimension_numbers = #tpu.dot_dimension_numbers<[1], [0], [0], [1], [0, 0, 1, 1], [], []>} : vector<8x5xf32>, vector<5x46xf32>, vector<8x46xf32> -> vector<8x46xf32>
    %cst_37 = arith.constant 0.000000e+00 : f32
    %55 = vector.broadcast %cst_37 : f32 to vector<8x46xf32>
    %56 = arith.select %10, %54, %55 : vector<8x46xi1>, vector<8x46xf32>
    %57 = arith.addf %53, %56 : vector<8x46xf32>
    %cst_38 = arith.constant dense<0.000000e+00> : vector<8x46xf32>
    %58 = tpu.matmul %24, %50, %cst_38 {dimension_numbers = #tpu.dot_dimension_numbers<[1], [0], [0], [1], [0, 0, 1, 1], [], []>} : vector<8x5xf32>, vector<5x46xf32>, vector<8x46xf32> -> vector<8x46xf32>
    %cst_39 = arith.constant 0.000000e+00 : f32
    %59 = vector.broadcast %cst_39 : f32 to vector<8x46xf32>
    %60 = arith.select %15, %58, %59 : vector<8x46xi1>, vector<8x46xf32>
    %61 = arith.addf %57, %60 : vector<8x46xf32>
    %cst_40 = arith.constant dense<0.000000e+00> : vector<8x256xf32>
    %62 = tpu.matmul %61, %17, %cst_40 {dimension_numbers = #tpu.dot_dimension_numbers<[1], [0], [0], [1], [0, 0, 1, 1], [], []>} : vector<8x46xf32>, vector<46x256xf32>, vector<8x256xf32> -> vector<8x256xf32>
    %63 = arith.addf %49, %62 : vector<8x256xf32>
    %cst_41 = arith.constant 0.000000e+00 : f32
    %64 = vector.broadcast %cst_41 : f32 to vector<8x256xf32>
    %65 = arith.maximumf %63, %64 : vector<8x256xf32>
    %c1_42 = arith.constant 1 : index
    %c0_43 = arith.constant 0 : index
    %c0_44 = arith.constant 0 : index
    %66 = vector.load %arg6[%c1_42, %c0_43, %c0_44] : memref<2x8x256xf32, #tpu.memory_space<vmem>>, vector<1x8x256xf32>
    %67 = vector.shape_cast %66 : vector<1x8x256xf32> to vector<8x256xf32>
    %68 = vector.shape_cast %65 : vector<8x256xf32> to vector<1x8x256xf32>
    tpu.vector_store %arg6[%c1_42, %c0_43, %c0_44], %68 {strides = array<i32>} : memref<2x8x256xf32, #tpu.memory_space<vmem>>, vector<1x8x256xf32>,
    return
  }
  func.func @transform_0(%arg0: i32) -> (i32, i32, i32) {
    %c0_i32 = arith.constant 0 : i32
    %c0_i32_0 = arith.constant 0 : i32
    %c0_i32_1 = arith.constant 0 : i32
    return %arg0, %c0_i32, %c0_i32_0 : i32, i32, i32
  }
  func.func @transform_1(%arg0: i32) -> (i32, i32) {
    %c0_i32 = arith.constant 0 : i32
    %c0_i32_0 = arith.constant 0 : i32
    %c0_i32_1 = arith.constant 0 : i32
    return %c0_i32, %c0_i32_0 : i32, i32
  }
  func.func @transform_2(%arg0: i32) -> (i32, i32) {
    %c0_i32 = arith.constant 0 : i32
    %c0_i32_0 = arith.constant 0 : i32
    %c0_i32_1 = arith.constant 0 : i32
    return %c0_i32, %c0_i32_0 : i32, i32
  }
  func.func @transform_3(%arg0: i32) -> (i32, i32, i32) {
    %c0_i32 = arith.constant 0 : i32
    %c0_i32_0 = arith.constant 0 : i32
    %c0_i32_1 = arith.constant 0 : i32
    %c0_i32_2 = arith.constant 0 : i32
    return %c0_i32, %c0_i32_0, %c0_i32_1 : i32, i32, i32
  }
  func.func @transform_4(%arg0: i32) -> (i32, i32) {
    %c0_i32 = arith.constant 0 : i32
    %c0_i32_0 = arith.constant 0 : i32
    %c0_i32_1 = arith.constant 0 : i32
    return %c0_i32, %c0_i32_0 : i32, i32
  }
  func.func @transform_5(%arg0: i32) -> (i32, i32, i32) {
    %c0_i32 = arith.constant 0 : i32
    %c0_i32_0 = arith.constant 0 : i32
    %c0_i32_1 = arith.constant 0 : i32
    return %arg0, %c0_i32, %c0_i32_0 : i32, i32, i32
  }
}

module attributes {stable_mosaic.version = 11 : i64} {
  func.func @psp_kernel(%arg0: i32, %arg1: memref<2x5x256xf32, #tpu.memory_space<vmem>>, %arg2: memref<256x46xf32, #tpu.memory_space<vmem>>, %arg3: memref<46x256xf32, #tpu.memory_space<vmem>>, %arg4: memref<3x8x5xf32, #tpu.memory_space<vmem>>, %arg5: memref<8x5xf32, #tpu.memory_space<vmem>>, %arg6: memref<2x8x256xf32, #tpu.memory_space<vmem>>) attributes {dimension_semantics = [#tpu.dimension_semantics<parallel>], iteration_bounds = array<i64: 1>, scalar_prefetch = 0 : i64, scratch_operands = 0 : i64, tpu.core_type = #tpu.core_type<tc>, window_params = [{transform_indices = @transform_0, window_bounds = array<i64: 2, 5, 256>}, {pipeline_mode = #tpu.pipeline_mode<synchronous>, transform_indices = @transform_1, window_bounds = array<i64: 256, 46>}, {pipeline_mode = #tpu.pipeline_mode<synchronous>, transform_indices = @transform_2, window_bounds = array<i64: 46, 256>}, {pipeline_mode = #tpu.pipeline_mode<synchronous>, transform_indices = @transform_3, window_bounds = array<i64: 3, 8, 5>}, {pipeline_mode = #tpu.pipeline_mode<synchronous>, transform_indices = @transform_4, window_bounds = array<i64: 8, 5>}, {transform_indices = @transform_5, window_bounds = array<i64: 2, 8, 256>}]} {
    %0 = tpu.iota {dimensions = array<i32: 1>} : vector<8x46xi32>
    %c0_i32 = arith.constant 0 : i32
    %1 = vector.broadcast %c0_i32 : i32 to vector<8x46xi32>
    %2 = arith.cmpi sge, %0, %1 : vector<8x46xi32>
    %c1_i32 = arith.constant 1 : i32
    %3 = vector.broadcast %c1_i32 : i32 to vector<8x46xi32>
    %4 = arith.cmpi slt, %0, %3 : vector<8x46xi32>
    %5 = arith.andi %2, %4 : vector<8x46xi1>
    %c1_i32_0 = arith.constant 1 : i32
    %6 = vector.broadcast %c1_i32_0 : i32 to vector<8x46xi32>
    %7 = arith.cmpi sge, %0, %6 : vector<8x46xi32>
    %c10_i32 = arith.constant 10 : i32
    %8 = vector.broadcast %c10_i32 : i32 to vector<8x46xi32>
    %9 = arith.cmpi slt, %0, %8 : vector<8x46xi32>
    %10 = arith.andi %7, %9 : vector<8x46xi1>
    %c10_i32_1 = arith.constant 10 : i32
    %11 = vector.broadcast %c10_i32_1 : i32 to vector<8x46xi32>
    %12 = arith.cmpi sge, %0, %11 : vector<8x46xi32>
    %c46_i32 = arith.constant 46 : i32
    %13 = vector.broadcast %c46_i32 : i32 to vector<8x46xi32>
    %14 = arith.cmpi slt, %0, %13 : vector<8x46xi32>
    %15 = arith.andi %12, %14 : vector<8x46xi1>
    %c0 = arith.constant 0 : index
    %c0_2 = arith.constant 0 : index
    %16 = vector.load %arg2[%c0, %c0_2] : memref<256x46xf32, #tpu.memory_space<vmem>>, vector<256x46xf32>
    %c0_3 = arith.constant 0 : index
    %c0_4 = arith.constant 0 : index
    %17 = vector.load %arg3[%c0_3, %c0_4] : memref<46x256xf32, #tpu.memory_space<vmem>>, vector<46x256xf32>
    %c0_5 = arith.constant 0 : index
    %c0_6 = arith.constant 0 : index
    %18 = vector.load %arg5[%c0_5, %c0_6] : memref<8x5xf32, #tpu.memory_space<vmem>>, vector<8x5xf32>
    %c0_7 = arith.constant 0 : index
    %c0_8 = arith.constant 0 : index
    %c0_9 = arith.constant 0 : index
    %19 = vector.load %arg4[%c0_7, %c0_8, %c0_9] : memref<3x8x5xf32, #tpu.memory_space<vmem>>, vector<1x8x5xf32>
    %20 = vector.shape_cast %19 : vector<1x8x5xf32> to vector<8x5xf32>
    %c1 = arith.constant 1 : index
    %c0_10 = arith.constant 0 : index
    %c0_11 = arith.constant 0 : index
    %21 = vector.load %arg4[%c1, %c0_10, %c0_11] : memref<3x8x5xf32, #tpu.memory_space<vmem>>, vector<1x8x5xf32>
    %22 = vector.shape_cast %21 : vector<1x8x5xf32> to vector<8x5xf32>
    %c2 = arith.constant 2 : index
    %c0_12 = arith.constant 0 : index
    %c0_13 = arith.constant 0 : index
    %23 = vector.load %arg4[%c2, %c0_12, %c0_13] : memref<3x8x5xf32, #tpu.memory_space<vmem>>, vector<1x8x5xf32>
    %24 = vector.shape_cast %23 : vector<1x8x5xf32> to vector<8x5xf32>
    %c0_14 = arith.constant 0 : index
    %c0_15 = arith.constant 0 : index
    %c0_16 = arith.constant 0 : index
    %25 = vector.load %arg1[%c0_14, %c0_15, %c0_16] : memref<2x5x256xf32, #tpu.memory_space<vmem>>, vector<1x5x256xf32>
    %26 = vector.shape_cast %25 : vector<1x5x256xf32> to vector<5x256xf32>
    %cst = arith.constant dense<0.000000e+00> : vector<8x256xf32>
    %27 = tpu.matmul %18, %26, %cst {dimension_numbers = #tpu.dot_dimension_numbers<[1], [0], [0], [1], [0, 0, 1, 1], [], []>} : vector<8x5xf32>, vector<5x256xf32>, vector<8x256xf32> -> vector<8x256xf32>
    %cst_17 = arith.constant dense<0.000000e+00> : vector<5x46xf32>
    %28 = tpu.matmul %26, %16, %cst_17 {dimension_numbers = #tpu.dot_dimension_numbers<[1], [0], [0], [1], [0, 0, 1, 1], [], []>} : vector<5x256xf32>, vector<256x46xf32>, vector<5x46xf32> -> vector<5x46xf32>
    %cst_18 = arith.constant dense<0.000000e+00> : vector<8x46xf32>
    %29 = tpu.matmul %20, %28, %cst_18 {dimension_numbers = #tpu.dot_dimension_numbers<[1], [0], [0], [1], [0, 0, 1, 1], [], []>} : vector<8x5xf32>, vector<5x46xf32>, vector<8x46xf32> -> vector<8x46xf32>
    %cst_19 = arith.constant 0.000000e+00 : f32
    %30 = vector.broadcast %cst_19 : f32 to vector<8x46xf32>
    %31 = arith.select %5, %29, %30 : vector<8x46xi1>, vector<8x46xf32>
    %cst_20 = arith.constant dense<0.000000e+00> : vector<8x46xf32>
    %32 = tpu.matmul %22, %28, %cst_20 {dimension_numbers = #tpu.dot_dimension_numbers<[1], [0], [0], [1], [0, 0, 1, 1], [], []>} : vector<8x5xf32>, vector<5x46xf32>, vector<8x46xf32> -> vector<8x46xf32>
    %cst_21 = arith.constant 0.000000e+00 : f32
    %33 = vector.broadcast %cst_21 : f32 to vector<8x46xf32>
    %34 = arith.select %10, %32, %33 : vector<8x46xi1>, vector<8x46xf32>
    %35 = arith.addf %31, %34 : vector<8x46xf32>
    %cst_22 = arith.constant dense<0.000000e+00> : vector<8x46xf32>
    %36 = tpu.matmul %24, %28, %cst_22 {dimension_numbers = #tpu.dot_dimension_numbers<[1], [0], [0], [1], [0, 0, 1, 1], [], []>} : vector<8x5xf32>, vector<5x46xf32>, vector<8x46xf32> -> vector<8x46xf32>
    %cst_23 = arith.constant 0.000000e+00 : f32
    %37 = vector.broadcast %cst_23 : f32 to vector<8x46xf32>
    %38 = arith.select %15, %36, %37 : vector<8x46xi1>, vector<8x46xf32>
    %39 = arith.addf %35, %38 : vector<8x46xf32>
    %cst_24 = arith.constant dense<0.000000e+00> : vector<8x256xf32>
    %40 = tpu.matmul %39, %17, %cst_24 {dimension_numbers = #tpu.dot_dimension_numbers<[1], [0], [0], [1], [0, 0, 1, 1], [], []>} : vector<8x46xf32>, vector<46x256xf32>, vector<8x256xf32> -> vector<8x256xf32>
    %41 = arith.addf %27, %40 : vector<8x256xf32>
    %cst_25 = arith.constant 0.000000e+00 : f32
    %42 = vector.broadcast %cst_25 : f32 to vector<8x256xf32>
    %43 = arith.maximumf %41, %42 : vector<8x256xf32>
    %c0_26 = arith.constant 0 : index
    %c0_27 = arith.constant 0 : index
    %c0_28 = arith.constant 0 : index
    %44 = vector.load %arg6[%c0_26, %c0_27, %c0_28] : memref<2x8x256xf32, #tpu.memory_space<vmem>>, vector<1x8x256xf32>
    %45 = vector.shape_cast %44 : vector<1x8x256xf32> to vector<8x256xf32>
    %46 = vector.shape_cast %43 : vector<8x256xf32> to vector<1x8x256xf32>
    tpu.vector_store %arg6[%c0_26, %c0_27, %c0_28], %46 {strides = array<i32>} : memref<2x8x256xf32, #tpu.memory_space<vmem>>, vector<1x8x256xf32>,
    %c1_29 = arith.constant 1 : index
    %c0_30 = arith.constant 0 : index
    %c0_31 = arith.constant 0 : index
    %47 = vector.load %arg1[%c1_29, %c0_30, %c0_31] : memref<2x5x256xf32, #tpu.memory_space<vmem>>, vector<1x5x256xf32>
    %48 = vector.shape_cast %47 : vector<1x5x256xf32> to vector<5x256xf32>
    %cst_32 = arith.constant dense<0.000000e+00> : vector<8x256xf32>
    %49 = tpu.matmul %18, %48, %cst_32 {dimension_numbers = #tpu.dot_dimension_numbers<[1], [0], [0], [1], [0, 0, 1, 1], [], []>} : vector<8x5xf32>, vector<5x256xf32>, vector<8x256xf32> -> vector<8x256xf32>
    %cst_33 = arith.constant dense<0.000000e+00> : vector<5x46xf32>
    %50 = tpu.matmul %48, %16, %cst_33 {dimension_numbers = #tpu.dot_dimension_numbers<[1], [0], [0], [1], [0, 0, 1, 1], [], []>} : vector<5x256xf32>, vector<256x46xf32>, vector<5x46xf32> -> vector<5x46xf32>
    %cst_34 = arith.constant dense<0.000000e+00> : vector<8x46xf32>
    %51 = tpu.matmul %20, %50, %cst_34 {dimension_numbers = #tpu.dot_dimension_numbers<[1], [0], [0], [1], [0, 0, 1, 1], [], []>} : vector<8x5xf32>, vector<5x46xf32>, vector<8x46xf32> -> vector<8x46xf32>
    %cst_35 = arith.constant 0.000000e+00 : f32
    %52 = vector.broadcast %cst_35 : f32 to vector<8x46xf32>
    %53 = arith.select %5, %51, %52 : vector<8x46xi1>, vector<8x46xf32>
    %cst_36 = arith.constant dense<0.000000e+00> : vector<8x46xf32>
    %54 = tpu.matmul %22, %50, %cst_36 {dimension_numbers = #tpu.dot_dimension_numbers<[1], [0], [0], [1], [0, 0, 1, 1], [], []>} : vector<8x5xf32>, vector<5x46xf32>, vector<8x46xf32> -> vector<8x46xf32>
    %cst_37 = arith.constant 0.000000e+00 : f32
    %55 = vector.broadcast %cst_37 : f32 to vector<8x46xf32>
    %56 = arith.select %10, %54, %55 : vector<8x46xi1>, vector<8x46xf32>
    %57 = arith.addf %53, %56 : vector<8x46xf32>
    %cst_38 = arith.constant dense<0.000000e+00> : vector<8x46xf32>
    %58 = tpu.matmul %24, %50, %cst_38 {dimension_numbers = #tpu.dot_dimension_numbers<[1], [0], [0], [1], [0, 0, 1, 1], [], []>} : vector<8x5xf32>, vector<5x46xf32>, vector<8x46xf32> -> vector<8x46xf32>
    %cst_39 = arith.constant 0.000000e+00 : f32
    %59 = vector.broadcast %cst_39 : f32 to vector<8x46xf32>
    %60 = arith.select %15, %58, %59 : vector<8x46xi1>, vector<8x46xf32>
    %61 = arith.addf %57, %60 : vector<8x46xf32>
    %cst_40 = arith.constant dense<0.000000e+00> : vector<8x256xf32>
    %62 = tpu.matmul %61, %17, %cst_40 {dimension_numbers = #tpu.dot_dimension_numbers<[1], [0], [0], [1], [0, 0, 1, 1], [], []>} : vector<8x46xf32>, vector<46x256xf32>, vector<8x256xf32> -> vector<8x256xf32>
    %63 = arith.addf %49, %62 : vector<8x256xf32>
    %cst_41 = arith.constant 0.000000e+00 : f32
    %64 = vector.broadcast %cst_41 : f32 to vector<8x256xf32>
    %65 = arith.maximumf %63, %64 : vector<8x256xf32>
    %c1_42 = arith.constant 1 : index
    %c0_43 = arith.constant 0 : index
    %c0_44 = arith.constant 0 : index
    %66 = vector.load %arg6[%c1_42, %c0_43, %c0_44] : memref<2x8x256xf32, #tpu.memory_space<vmem>>, vector<1x8x256xf32>
    %67 = vector.shape_cast %66 : vector<1x8x256xf32> to vector<8x256xf32>
    %68 = vector.shape_cast %65 : vector<8x256xf32> to vector<1x8x256xf32>
    tpu.vector_store %arg6[%c1_42, %c0_43, %c0_44], %68 {strides = array<i32>} : memref<2x8x256xf32, #tpu.memory_space<vmem>>, vector<1x8x256xf32>,
    return
  }
  func.func @transform_0(%arg0: i32) -> (i32, i32, i32) {
    %c0_i32 = arith.constant 0 : i32
    %c0_i32_0 = arith.constant 0 : i32
    %c0_i32_1 = arith.constant 0 : i32
    return %arg0, %c0_i32, %c0_i32_0 : i32, i32, i32
  }
  func.func @transform_1(%arg0: i32) -> (i32, i32) {
    %c0_i32 = arith.constant 0 : i32
    %c0_i32_0 = arith.constant 0 : i32
    %c0_i32_1 = arith.constant 0 : i32
    return %c0_i32, %c0_i32_0 : i32, i32
  }
  func.func @transform_2(%arg0: i32) -> (i32, i32) {
    %c0_i32 = arith.constant 0 : i32
    %c0_i32_0 = arith.constant 0 : i32
    %c0_i32_1 = arith.constant 0 : i32
    return %c0_i32, %c0_i32_0 : i32, i32
  }
  func.func @transform_3(%arg0: i32) -> (i32, i32, i32) {
    %c0_i32 = arith.constant 0 : i32
    %c0_i32_0 = arith.constant 0 : i32
    %c0_i32_1 = arith.constant 0 : i32
    %c0_i32_2 = arith.constant 0 : i32
    return %c0_i32, %c0_i32_0, %c0_i32_1 : i32, i32, i32
  }
  func.func @transform_4(%arg0: i32) -> (i32, i32) {
    %c0_i32 = arith.constant 0 : i32
    %c0_i32_0 = arith.constant 0 : i32
    %c0_i32_1 = arith.constant 0 : i32
    return %c0_i32, %c0_i32_0 : i32, i32
  }
  func.func @transform_5(%arg0: i32) -> (i32, i32, i32) {
    %c0_i32 = arith.constant 0 : i32
    %c0_i32_0 = arith.constant 0 : i32
    %c0_i32_1 = arith.constant 0 : i32
    return %arg0, %c0_i32, %c0_i32_0 : i32, i32, i32
  }
}

</mosaic_0001>

<bundles_post_ra>
// kernel: tpu_custom_call.1
= control target key start
LH: loop header
LB: loop body
LE: loop exit
PB: predicated region body
PF: predicated region fallthrough
CT: control target
= control target key end

     0   :  { %s1671_s0 = inlined_call_operand.vmem [shape: f32[2,5,256], index: 0, kind: input, shape index: {}]   ;;  %s1672_s1 = inlined_call_operand.vmem [shape: f32[256,46], index: 1, kind: input, shape index: {}]   ;;  %s1673_s2 = inlined_call_operand.vmem [shape: f32[46,256], index: 2, kind: input, shape index: {}]   ;;  %s1674_s3 = inlined_call_operand.vmem [shape: f32[3,8,5], index: 3, kind: input, shape index: {}]   ;;  %s1675_s4 = inlined_call_operand.vmem [shape: f32[8,5], index: 4, kind: input, shape index: {}]   ;;  %s1676_s5 = inlined_call_operand.hbm [shape: f32[2,8,256], index: 5, kind: output, shape index: {}]  }
   0x1   :  { %v48_v0 = vld [vmem:[%s1672_s1 + $0x80] sm:$0xff]  ;;  %v49_v1 = vld [vmem:[%s1672_s1 + $0x88] sm:$0xff]  ;;  %v50_v5 = vld [vmem:[%s1672_s1 + $0x90] sm:$0xff] }
   0x2   :  { %v32_v2 = vld [vmem:[%s1672_s1] sm:$0xff]  ;;  %v1323_v3 = vpack.c.bf16 %v49_v1, %v48_v0  ;;  %v33_v4 = vld [vmem:[%s1672_s1 + $0x8] sm:$0xff]  ;;  %v51_v6 = vld [vmem:[%s1672_s1 + $0x98] sm:$0xff] }
   0x3   :  { %v1334_v7 = vpack.c.bf16 %v33_v4, %v32_v2  ;;  %v1336_v8 = vpack.c.bf16 %v51_v6, %v50_v5  ;;  %v34_v9 = vld [vmem:[%s1672_s1 + $0x10] sm:$0xff]  ;;  %v35_v10 = vld [vmem:[%s1672_s1 + $0x18] sm:$0xff]  ;;  %v52_v11 = vld [vmem:[%s1672_s1 + $0xa0] sm:$0xff] }
   0x4   :  { %1153 = vmatprep.subr.bf16.mxu0 %v1323_v3  ;;  %v53_v12 = vld [vmem:[%s1672_s1 + $0xa8] sm:$0xff]  ;;  %v1352_v13 = vpack.c.bf16 %v35_v10, %v34_v9  ;;  %v36_v15 = vld [vmem:[%s1672_s1 + $0x20] sm:$0xff]  ;;  %v54_v17 = vld [vmem:[%s1672_s1 + $0xb0] sm:$0xff] }
   0x5   :  { %1155 = vmatpush3.bf16.msra.mxu0 %v1334_v7  ;;  %v1355_v14 = vpack.c.bf16 %v53_v12, %v52_v11  ;;  %v37_v16 = vld [vmem:[%s1672_s1 + $0x28] sm:$0xff]  ;;  %v55_v18 = vld [vmem:[%s1672_s1 + $0xb8] sm:$0xff]  ;;  %v38_v21 = vld [vmem:[%s1672_s1 + $0x30] sm:$0xff] }
   0x6   :  { %1157 = vmatprep.subr.bf16.mxu0 %v1336_v8  ;;  %v1370_v19 = vpack.c.bf16 %v37_v16, %v36_v15  ;;  %v1373_v20 = vpack.c.bf16 %v55_v18, %v54_v17  ;;  %v39_v22 = vld [vmem:[%s1672_s1 + $0x38] sm:$0xff]  ;;  %v56_v23 = vld [vmem:[%s1672_s1 + $0xc0] sm:$0xff]  ;;  %v57_v24 = vld [vmem:[%s1672_s1 + $0xc8] sm:$0xff] }
   0x7   :  { %v1390_v25 = vld [vmem:[%s1671_s0 + $0x8] sm:$0x1f] }
   0x8   :  { %148 = vmatprep.mubr.f32.mxu0 %v1390_v25 }
   0x9   :  { %1159 = vmatpush3.bf16.msra.mxu0 %v1352_v13 }
   0xa   :  { %1161 = vmatprep.subr.bf16.mxu0 %v1355_v14 }
   0xb   :  { %10 = vsyncpa [#allocation3], 0  ;;  %v1394_v26 = vpack.c.bf16 %v39_v22, %v38_v21  ;;  %v1397_v27 = vpack.c.bf16 %v57_v24, %v56_v23  ;;  %v40_v28 = vld [vmem:[%s1672_s1 + $0x40] sm:$0xff]  ;;  %v41_v29 = vld [vmem:[%s1672_s1 + $0x48] sm:$0xff]  ;;  %v1278_v50 = vmov 0.0   ;;  %vm1279_vm0 = vmmov 0  }
   0xc   :  { %v58_v30 = vld [vmem:[%s1672_s1 + $0xd0] sm:$0xff]  ;;  %v59_v31 = vld [vmem:[%s1672_s1 + $0xd8] sm:$0xff]  ;;  %v1412_v32 = vpack.c.bf16 %v41_v29, %v40_v28  ;;  %v60_v36 = vld [vmem:[%s1672_s1 + $0xe0] sm:$0xff]  ;;  %1122 = vmatprep.subr.mxu1 %v1278_v50  ;;  %1124 = vmatprep.mubr.msk.f32.mxu1 %vm1279_vm0, %v1278_v50  ;;  %vm158_vm1 = vcmask 1044480   ;;  %vm154_vm2 = vcmask 39936   ;;  %vm387_vm3 = vcmask 1045504  }
   0xd   :  { %1163 = vmatpush3.bf16.msra.mxu0 %v1370_v19  ;;  %v1415_v33 = vpack.c.bf16 %v59_v31, %v58_v30  ;;  %v42_v34 = vld [vmem:[%s1672_s1 + $0x50] sm:$0xff]  ;;  %v43_v35 = vld [vmem:[%s1672_s1 + $0x58] sm:$0xff]  ;;  %v61_v37 = vld [vmem:[%s1672_s1 + $0xe8] sm:$0xff]  ;;  %vm1280_vm4 = vmmov 1   ;;  %v21_v17 = vlaneseq  ;;  %vm383_vm13 = vcmask 375808  }
   0xe   :  { %1165 = vmatprep.subr.bf16.mxu0 %v1373_v20  ;;  %v1430_v38 = vpack.c.bf16 %v43_v35, %v42_v34  ;;  %v1433_v39 = vpack.c.bf16 %v61_v37, %v60_v36  ;;  %v44_v40 = vld [vmem:[%s1672_s1 + $0x60] sm:$0xff]  ;;  %v45_v41 = vld [vmem:[%s1672_s1 + $0x68] sm:$0xff]  ;;  %v62_v42 = vld [vmem:[%s1672_s1 + $0xf0] sm:$0xff] }
   0xf   :  { %v63_v43 = vld [vmem:[%s1672_s1 + $0xf8] sm:$0xff]  ;;  %v1448_v44 = vpack.c.bf16 %v45_v41, %v44_v40  ;;  %v46_v46 = vld [vmem:[%s1672_s1 + $0x70] sm:$0xff]  ;;  %v1467_v49 = vld [vmem:[%s1671_s0] sm:$0x1f]  ;;  %v1571_v18 = vand.u32 127, %v21_v17 }
  0x10   :  { %v1451_v45 = vpack.c.bf16 %v63_v43, %v62_v42  ;;  %v47_v47 = vld [vmem:[%s1672_s1 + $0x78] sm:$0xff]  ;;  %v1479_v54 = vld [vmem:[%s1674_s3] sm:$0xff]  ;;  %v1491_v55 = vld [vmem:[%s1674_s3 + $0x8] sm:$0xff] }
  0x11   :  { %1167 = vmatpush3.bf16.msra.mxu0 %v1394_v26  ;;  %v1460_v48 = vpack.c.bf16 %v47_v47, %v46_v46  ;;  %v1502_v56 = vld [vmem:[%s1674_s3 + $0x10] sm:$0xff]  ;;  %v65_v57 = vld [vmem:[%s1673_s2 + $0x8] sm:$0xff]  ;;  %v67_v58 = vld [vmem:[%s1673_s2 + $0x18] sm:$0xff]  ;;  %vm26_vm6 = vcmp.ge.s32.totalorder %v1571_v18, 1  ;;  %vm27_vm7 = vcmp.lt.s32.totalorder %v1571_v18, 10  ;;  %vm24_vm8 = vcmp.lt.s32.totalorder %v1571_v18, 1 }
  0x12   :  { %1169 = vmatprep.subr.bf16.mxu0 %v1397_v27  ;;  %v1513_v59 = vpack.c.bf16 %v67_v58, %v65_v57  ;;  %v64_v60 = vld [vmem:[%s1673_s2] sm:$0xff]  ;;  %v66_v61 = vld [vmem:[%s1673_s2 + $0x10] sm:$0xff]  ;;  %v69_v63 = vld [vmem:[%s1673_s2 + $0x28] sm:$0xff]  ;;  %vm29_vm10 = vcmp.ge.s32.totalorder %v1571_v18, 10  ;;  %vm30_vm11 = vcmp.lt.s32.totalorder %v1571_v18, 46 }
  0x13   :  { %v1521_v62 = vpack.c.bf16 %v66_v61, %v64_v60  ;;  %v71_v0 = vld [vmem:[%s1673_s2 + $0x38] sm:$0xff]  ;;  %v68_v2 = vld [vmem:[%s1673_s2 + $0x20] sm:$0xff]  ;;  %v70_v4 = vld [vmem:[%s1673_s2 + $0x30] sm:$0xff] }
  0x14   :  { %v1531_v1 = vpack.c.bf16 %v71_v0, %v69_v63  ;;  %v1539_v5 = vpack.c.bf16 %v70_v4, %v68_v2  ;;  %v73_v6 = vld [vmem:[%s1673_s2 + $0x48] sm:$0xff]  ;;  %v75_v9 = vld [vmem:[%s1673_s2 + $0x58] sm:$0x3f]  ;;  %v72_v11 = vld [vmem:[%s1673_s2 + $0x40] sm:$0xff] }
  0x15   :  { %1171 = vmatpush3.bf16.msra.mxu0 %v1412_v32  ;;  %v1549_v10 = vpack.c.bf16 %v75_v9, %v73_v6  ;;  %v74_v12 = vld [vmem:[%s1673_s2 + $0x50] sm:$0x3f]  ;;  %vm1557_vm5 = vmpackc.low %vm387_vm3, %vm1280_vm4  ;;  %v76_v40 = vld [vmem:[%s1675_s4] sm:$0xff] }
  0x16   :  { %1173 = vmatprep.subr.bf16.mxu0 %v1415_v33  ;;  %v1561_v16 = vpack.c.bf16 %v74_v12, %v72_v11  ;;  %vm1576_vm9 = vmand %vm26_vm6, %vm27_vm7  ;;  %v1027_v41 = vld [vmem:[%s1671_s0 + $0x18] sm:$0x1f] }
  0x17   :  { %vm1586_vm12 = vmand %vm29_vm10, %vm30_vm11 }
  0x19   :  { %1175 = vmatpush3.bf16.msra.mxu0 %v1430_v38 }
  0x1a   :  { %1177 = vmatprep.subr.bf16.mxu0 %v1433_v39 }
  0x1d   :  { %1179 = vmatpush3.bf16.msra.mxu0 %v1448_v44 }
  0x1e   :  { %1181 = vmatprep.subr.bf16.mxu0 %v1451_v45 }
  0x21   :  { %1183 = vmatpush3.bf16.msra.mxu0 %v1460_v48 }
  0x22   :  { %1137 = vmatprep.subr.mxu0 %v1278_v50 }
  0x24   :  { %149 = vmatmul.mubr.f32.vlgmr.msra.gmra.mrb[0].mxu0 %v1467_v49 }
  0x25   :  { %1139 = vmatprep.mubr.msk.f32.mxu0 %vm1279_vm0, %v1278_v50 }
  0xf7   :  { %v1072_v51 = vpop.f32.mrb[0].mxu0 }
  0xf8   :  { %v1073_v52 = vpop.f32.mrb[1].mxu0 }
  0xf9   :  { %v1074_v53 = vadd.f32 %v1073_v52, %v1072_v51 }
  0xfb   :  { %1123 = vmatpush3.msk.msra.mxu1 %vm158_vm1, %v1074_v53 }
  0xfc   :  { %1125 = vmatmul.mubr.msk.f32.vlgmr.msra.gmra.mrb[0].mxu1 %vm154_vm2, %v1479_v54  ;;  %1127 = vmatprep.subr.mxu1 %v1278_v50 }
  0xfd   :  { %1128 = vmatpush3.msk.msra.mxu1 %vm158_vm1, %v1074_v53  ;;  %1129 = vmatprep.mubr.msk.f32.mxu1 %vm1279_vm0, %v1278_v50 }
  0xfe   :  { %1132 = vmatprep.subr.mxu1 %v1278_v50 }
 0x100   :  { %1130 = vmatmul.mubr.msk.f32.vlgmr.msra.gmra.mrb[2].mxu1 %vm154_vm2, %v1491_v55 }
 0x101   :  { %1133 = vmatpush3.msk.msra.mxu1 %vm158_vm1, %v1074_v53  ;;  %1134 = vmatprep.mubr.msk.f32.mxu1 %vm1279_vm0, %v1278_v50 }
 0x102   :  { %1185 = vmatprep.subr.bf16.mxu1 %v1513_v59 }
 0x104   :  { %1135 = vmatmul.mubr.msk.f32.vlgmr.msra.gmra.mrb[4].mxu1 %vm154_vm2, %v1502_v56 }
 0x105   :  { %458 = vmatprep.mubr.f32.mxu1 %v1278_v50  ;;  %1187 = vmatpush1.bf16.msra.mxu1 %v1521_v62 }
 0x106   :  { %1189 = vmatprep.subr.bf16.mxu1 %v1531_v1 }
 0x109   :  { %1191 = vmatpush1.bf16.msra.mxu1 %v1539_v5 }
 0x10a   :  { %1194 = vmatprep.subr.msk.bf16.mxu1 %vm1557_vm5, %v1549_v10 }
 0x10d   :  { %1197 = vmatpush1.bf16.msk.msra.mxu1 %vm1557_vm5, %v1561_v16 }
 0x10e   :  { %1023 = vmatprep.subr.msk.mxu1 %vm158_vm1, %v1390_v25 }
 0x1cf   :  { %v228_v21 = vpop.f32.mrb[0].mxu1 }
 0x1d0   :  { %v1126_v22 = vpop.f32.mrb[1].mxu1  ;;  %v232_v25 = vsel %vm24_vm8, %v228_v21, 0.0 }
 0x1d3   :  { %v302_v24 = vpop.f32.mrb[2].mxu1 }
 0x1d4   :  { %v306_v28 = vsel %vm1576_vm9, %v302_v24, 0.0  ;;  %v1131_v29 = vpop.f32.mrb[3].mxu1 }
 0x1d5   :  { %v307_v30 = vadd.f32 %v306_v28, %v232_v25 }
 0x1d7   :  { %v377_v34 = vpop.f32.mrb[4].mxu1 }
 0x1d8   :  { %v381_v35 = vsel %vm1586_vm12, %v377_v34, 0.0  ;;  %v1136_v36 = vpop.f32.mrb[5].mxu1 }
 0x1d9   :  { %v382_v37 = vadd.f32 %v381_v35, %v307_v30 }
 0x1db   :  { %1022 = vmatmul.mubr.msk.f32.vlgmr.msra.gmra.mrb[6].mxu1 %vm383_vm13, %v382_v37 }
 0x1dc   :  { %1024 = vmatpush1.msk.msra.mxu1 %vm158_vm1, %v1467_v49  ;;  %538 = vmatprep.mubr.f32.mxu1 %v1278_v50 }
 0x1dd   :  { %1199 = vmatprep.subr.bf16.mxu1 %v1323_v3  ;;  %v1026_v3 = vld [vmem:[%s1671_s0 + $0x10] sm:$0x1f]  ;;  %s1281_s0 = smov [#allocation2]  }
 0x1de   :  { %s1001_s17 = sshll.u32 %s1281_s0, 4  ;;  %s1002_s17 = int_to_ptr.vmem [resolvable:$true] %s1001_s17 }
 0x1df   :  { %s1254_s18 = scalar_lea.vmem %s1002_s17, 512  ;;  %p1259_p1 = scmp.lt.s32.totalorder %s1002_s17, %s1002_s17 }
 0x1e0   :  { %p1255_p0 = scmp.ne.s32.totalorder %s1002_s17, %s1254_s18  ;;  %p1260_p2 = scmp.lt.s32.totalorder %s1254_s18, %s1254_s18 }
 0x1e2   :  { %p1261_p3 = por %p1260_p2, %p1259_p1 }
 0x1e3   :  { %1025 = vmatmul.mubr.msk.f32.vlgmr.msra.gmra.mrb[6].mxu1 %vm154_vm2, %v76_v40 }
 0x1e4   :  { %1201 = vmatpush3.bf16.msra.mxu1 %v1334_v7  ;;  %616 = vmatprep.mubr.f32.mxu1 %v1027_v41  ;;  %p1262_p4 = pnand %p1261_p3, %p1255_p0 }
 0x1e5   :  { %1203 = vmatprep.subr.bf16.mxu1 %v1336_v8 }
 0x1e8   :  { %1205 = vmatpush3.bf16.msra.mxu1 %v1352_v13 }
 0x1e9   :  { %1207 = vmatprep.subr.bf16.mxu1 %v1355_v14 }
 0x1ec   :  { %1209 = vmatpush3.bf16.msra.mxu1 %v1370_v19 }
 0x1ed   :  { %1211 = vmatprep.subr.bf16.mxu1 %v1373_v20 }
 0x1f0   :  { %1213 = vmatpush3.bf16.msra.mxu1 %v1394_v26 }
 0x1f1   :  { %1215 = vmatprep.subr.bf16.mxu1 %v1397_v27 }
 0x1f4   :  { %1217 = vmatpush3.bf16.msra.mxu1 %v1412_v32 }
 0x1f5   :  { %1219 = vmatprep.subr.bf16.mxu1 %v1415_v33 }
 0x1f8   :  { %1221 = vmatpush3.bf16.msra.mxu1 %v1430_v38 }
 0x1f9   :  { %1223 = vmatprep.subr.bf16.mxu1 %v1433_v39 }
 0x1fc   :  { %1225 = vmatpush3.bf16.msra.mxu1 %v1448_v44 }
 0x1fd   :  { %1227 = vmatprep.subr.bf16.mxu1 %v1451_v45 }
 0x200   :  { %1229 = vmatpush3.bf16.msra.mxu1 %v1460_v48 }
 0x203   :  { %617 = vmatmul.mubr.f32.vlgmr.msra.gmra.mrb[8].mxu1 %v1026_v3 }
 0x2b6   :  { %v540_v7 = vpop.f32.mrb[6].mxu1 }
 0x2b7   :  { %v545_v8 = vmax.f32 %v540_v7, 0.0  ;;  %v542_v13 = vpop.f32.mrb[7].mxu1 }
 0x2b8   :  { %v546_v14 = vmax.f32 %v542_v13, 0.0 }
 0x2b9   :  { %547 = vst [vmem:[#allocation2] sm:$0xff] %v545_v8 }
 0x2ba   :  { %548 = vst [vmem:[#allocation2 + $0x8] sm:$0xff] %v546_v14 }
 0x2d6   :  { %v1113_v19 = vpop.f32.mrb[8].mxu1 }
 0x2d7   :  { %v1114_v20 = vpop.f32.mrb[9].mxu1 }
 0x2d8   :  { %v1115_v26 = vadd.f32 %v1114_v20, %v1113_v19 }
 0x2da   :  { %1138 = vmatpush3.msk.msra.mxu0 %vm158_vm1, %v1115_v26 }
 0x2db   :  { %1140 = vmatmul.mubr.msk.f32.vlgmr.msra.gmra.mrb[2].mxu0 %vm154_vm2, %v1479_v54  ;;  %1142 = vmatprep.subr.mxu0 %v1278_v50 }
 0x2dc   :  { %1143 = vmatpush3.msk.msra.mxu0 %vm158_vm1, %v1115_v26  ;;  %1144 = vmatprep.mubr.msk.f32.mxu0 %vm1279_vm0, %v1278_v50 }
 0x2dd   :  { %1147 = vmatprep.subr.mxu0 %v1278_v50 }
 0x2df   :  { %1145 = vmatmul.mubr.msk.f32.vlgmr.msra.gmra.mrb[4].mxu0 %vm154_vm2, %v1491_v55 }
 0x2e0   :  { %1148 = vmatpush3.msk.msra.mxu0 %vm158_vm1, %v1115_v26  ;;  %1149 = vmatprep.mubr.msk.f32.mxu0 %vm1279_vm0, %v1278_v50 }
 0x2e1   :  { %1231 = vmatprep.subr.bf16.mxu0 %v1513_v59 }
 0x2e3   :  { %1150 = vmatmul.mubr.msk.f32.vlgmr.msra.gmra.mrb[6].mxu0 %vm154_vm2, %v1502_v56 }
 0x2e4   :  { %1233 = vmatpush1.bf16.msra.mxu0 %v1521_v62  ;;  %907 = vmatprep.mubr.f32.mxu0 %v1278_v50 }
 0x2e5   :  { %1235 = vmatprep.subr.bf16.mxu0 %v1531_v1 }
 0x2e8   :  { %1237 = vmatpush1.bf16.msra.mxu0 %v1539_v5 }
 0x2e9   :  { %1240 = vmatprep.subr.msk.bf16.mxu0 %vm1557_vm5, %v1549_v10 }
 0x2ec   :  { %1243 = vmatpush1.bf16.msk.msra.mxu0 %vm1557_vm5, %v1561_v16 }
 0x2ed   :  { %1037 = vmatprep.subr.msk.mxu0 %vm158_vm1, %v1027_v41 }
 0x3ae   :  { %v691_v27 = vpop.f32.mrb[2].mxu0 }
 0x3af   :  { %v1141_v32 = vpop.f32.mrb[3].mxu0  ;;  %v695_v38 = vsel %vm24_vm8, %v691_v27, 0.0 }
 0x3b2   :  { %v762_v33 = vpop.f32.mrb[4].mxu0 }
 0x3b3   :  { %v766_v39 = vsel %vm1576_vm9, %v762_v33, 0.0  ;;  %v1146_v42 = vpop.f32.mrb[5].mxu0 }
 0x3b4   :  { %v767_v43 = vadd.f32 %v766_v39, %v695_v38 }
 0x3b6   :  { %v834_v44 = vpop.f32.mrb[6].mxu0 }
 0x3b7   :  { %v838_v45 = vsel %vm1586_vm12, %v834_v44, 0.0  ;;  %v1151_v46 = vpop.f32.mrb[7].mxu0 }
 0x3b8   :  { %v839_v47 = vadd.f32 %v838_v45, %v767_v43 }
 0x3ba   :  { %1036 = vmatmul.mubr.msk.f32.vlgmr.msra.gmra.mrb[8].mxu0 %vm383_vm13, %v839_v47 }
 0x3bb   :  { %1038 = vmatpush1.msk.msra.mxu0 %vm158_vm1, %v1026_v3  ;;  %984 = vmatprep.mubr.f32.mxu0 %v1278_v50 }
 0x3c2   :  { %1039 = vmatmul.mubr.msk.f32.vlgmr.msra.gmra.mrb[8].mxu0 %vm154_vm2, %v76_v40 }
 0x495   :  { %v986_v48 = vpop.f32.mrb[8].mxu0 }
 0x496   :  { %v991_v49 = vmax.f32 %v986_v48, 0.0  ;;  %v988_v51 = vpop.f32.mrb[9].mxu0 }
 0x497   :  { %v992_v52 = vmax.f32 %v988_v51, 0.0 }
 0x498   :  { %994 = vst [vmem:[#allocation2 + $0x10] sm:$0xff] %v991_v49 }
 0x499   :  { %995 = vst [vmem:[#allocation2 + $0x18] sm:$0xff] %v992_v52 }
 0x49a   :  { %1265 = shalt.err (!%p1262_p4)
}
 0x49b   :  { %s1266_s21 = scalar_lea.hbm %s1676_s5, 512 }
 0x49c   :  { %p1267_p5 = scmp.ne.s32.totalorder %s1676_s5, %s1266_s21  ;;  %p1270_p6 = scmp.lt.u32.totalorder %s1266_s21, %s1676_s5 }
 0x49e   :  { %p1272_p7 = pnand %p1270_p6, %p1267_p5 }
 0x4a0   :  { %1275 = shalt.err (!%p1272_p7)
}
 0x4a1   :  { %s1282_s25 = smov 256   ;;  %s1283_s26 = smov 16  }
 0x4a2   :  { %1007 = dma.vmem_to_hbm [thread:$0]  %s1002_s17, 512, %s1676_s5, [#allocation3], %s1282_s25, %s1282_s25, %s1283_s26  }
 0x4a3   :  { %1276 = dma.done.wait [#allocation3], 512  }
 0x4a4   :  { %1277 = vsyncadd [#allocation3], 4294966784 }
 0x4a5   :  { %1011 = vsyncpa [#allocation3], 1 }

// kernel: tpu_custom_call.1
= control target key start
LH: loop header
LB: loop body
LE: loop exit
PB: predicated region body
PF: predicated region fallthrough
CT: control target
= control target key end

     0   :  { %s1671_s0 = inlined_call_operand.vmem [shape: f32[2,5,256], index: 0, kind: input, shape index: {}]   ;;  %s1672_s1 = inlined_call_operand.vmem [shape: f32[256,46], index: 1, kind: input, shape index: {}]   ;;  %s1673_s2 = inlined_call_operand.vmem [shape: f32[46,256], index: 2, kind: input, shape index: {}]   ;;  %s1674_s3 = inlined_call_operand.vmem [shape: f32[3,8,5], index: 3, kind: input, shape index: {}]   ;;  %s1675_s4 = inlined_call_operand.vmem [shape: f32[8,5], index: 4, kind: input, shape index: {}]   ;;  %s1676_s5 = inlined_call_operand.hbm [shape: f32[2,8,256], index: 5, kind: output, shape index: {}]  }
   0x1   :  { %v48_v0 = vld [vmem:[%s1672_s1 + $0x80] sm:$0xff]  ;;  %v49_v1 = vld [vmem:[%s1672_s1 + $0x88] sm:$0xff]  ;;  %v50_v5 = vld [vmem:[%s1672_s1 + $0x90] sm:$0xff] }
   0x2   :  { %v32_v2 = vld [vmem:[%s1672_s1] sm:$0xff]  ;;  %v1323_v3 = vpack.c.bf16 %v49_v1, %v48_v0  ;;  %v33_v4 = vld [vmem:[%s1672_s1 + $0x8] sm:$0xff]  ;;  %v51_v6 = vld [vmem:[%s1672_s1 + $0x98] sm:$0xff] }
   0x3   :  { %v1334_v7 = vpack.c.bf16 %v33_v4, %v32_v2  ;;  %v1336_v8 = vpack.c.bf16 %v51_v6, %v50_v5  ;;  %v34_v9 = vld [vmem:[%s1672_s1 + $0x10] sm:$0xff]  ;;  %v35_v10 = vld [vmem:[%s1672_s1 + $0x18] sm:$0xff]  ;;  %v52_v11 = vld [vmem:[%s1672_s1 + $0xa0] sm:$0xff] }
   0x4   :  { %1153 = vmatprep.subr.bf16.mxu0 %v1323_v3  ;;  %v53_v12 = vld [vmem:[%s1672_s1 + $0xa8] sm:$0xff]  ;;  %v1352_v13 = vpack.c.bf16 %v35_v10, %v34_v9  ;;  %v36_v15 = vld [vmem:[%s1672_s1 + $0x20] sm:$0xff]  ;;  %v54_v17 = vld [vmem:[%s1672_s1 + $0xb0] sm:$0xff] }
   0x5   :  { %1155 = vmatpush3.bf16.msra.mxu0 %v1334_v7  ;;  %v1355_v14 = vpack.c.bf16 %v53_v12, %v52_v11  ;;  %v37_v16 = vld [vmem:[%s1672_s1 + $0x28] sm:$0xff]  ;;  %v55_v18 = vld [vmem:[%s1672_s1 + $0xb8] sm:$0xff]  ;;  %v38_v21 = vld [vmem:[%s1672_s1 + $0x30] sm:$0xff] }
   0x6   :  { %1157 = vmatprep.subr.bf16.mxu0 %v1336_v8  ;;  %v1370_v19 = vpack.c.bf16 %v37_v16, %v36_v15  ;;  %v1373_v20 = vpack.c.bf16 %v55_v18, %v54_v17  ;;  %v39_v22 = vld [vmem:[%s1672_s1 + $0x38] sm:$0xff]  ;;  %v56_v23 = vld [vmem:[%s1672_s1 + $0xc0] sm:$0xff]  ;;  %v57_v24 = vld [vmem:[%s1672_s1 + $0xc8] sm:$0xff] }
   0x7   :  { %v1390_v25 = vld [vmem:[%s1671_s0 + $0x8] sm:$0x1f] }
   0x8   :  { %148 = vmatprep.mubr.f32.mxu0 %v1390_v25 }
   0x9   :  { %1159 = vmatpush3.bf16.msra.mxu0 %v1352_v13 }
   0xa   :  { %1161 = vmatprep.subr.bf16.mxu0 %v1355_v14 }
   0xb   :  { %10 = vsyncpa [#allocation3], 0  ;;  %v1394_v26 = vpack.c.bf16 %v39_v22, %v38_v21  ;;  %v1397_v27 = vpack.c.bf16 %v57_v24, %v56_v23  ;;  %v40_v28 = vld [vmem:[%s1672_s1 + $0x40] sm:$0xff]  ;;  %v41_v29 = vld [vmem:[%s1672_s1 + $0x48] sm:$0xff]  ;;  %v1278_v50 = vmov 0.0   ;;  %vm1279_vm0 = vmmov 0  }
   0xc   :  { %v58_v30 = vld [vmem:[%s1672_s1 + $0xd0] sm:$0xff]  ;;  %v59_v31 = vld [vmem:[%s1672_s1 + $0xd8] sm:$0xff]  ;;  %v1412_v32 = vpack.c.bf16 %v41_v29, %v40_v28  ;;  %v60_v36 = vld [vmem:[%s1672_s1 + $0xe0] sm:$0xff]  ;;  %1122 = vmatprep.subr.mxu1 %v1278_v50  ;;  %1124 = vmatprep.mubr.msk.f32.mxu1 %vm1279_vm0, %v1278_v50  ;;  %vm158_vm1 = vcmask 1044480   ;;  %vm154_vm2 = vcmask 39936   ;;  %vm387_vm3 = vcmask 1045504  }
   0xd   :  { %1163 = vmatpush3.bf16.msra.mxu0 %v1370_v19  ;;  %v1415_v33 = vpack.c.bf16 %v59_v31, %v58_v30  ;;  %v42_v34 = vld [vmem:[%s1672_s1 + $0x50] sm:$0xff]  ;;  %v43_v35 = vld [vmem:[%s1672_s1 + $0x58] sm:$0xff]  ;;  %v61_v37 = vld [vmem:[%s1672_s1 + $0xe8] sm:$0xff]  ;;  %vm1280_vm4 = vmmov 1   ;;  %v21_v17 = vlaneseq  ;;  %vm383_vm13 = vcmask 375808  }
   0xe   :  { %1165 = vmatprep.subr.bf16.mxu0 %v1373_v20  ;;  %v1430_v38 = vpack.c.bf16 %v43_v35, %v42_v34  ;;  %v1433_v39 = vpack.c.bf16 %v61_v37, %v60_v36  ;;  %v44_v40 = vld [vmem:[%s1672_s1 + $0x60] sm:$0xff]  ;;  %v45_v41 = vld [vmem:[%s1672_s1 + $0x68] sm:$0xff]  ;;  %v62_v42 = vld [vmem:[%s1672_s1 + $0xf0] sm:$0xff] }
   0xf   :  { %v63_v43 = vld [vmem:[%s1672_s1 + $0xf8] sm:$0xff]  ;;  %v1448_v44 = vpack.c.bf16 %v45_v41, %v44_v40  ;;  %v46_v46 = vld [vmem:[%s1672_s1 + $0x70] sm:$0xff]  ;;  %v1467_v49 = vld [vmem:[%s1671_s0] sm:$0x1f]  ;;  %v1571_v18 = vand.u32 127, %v21_v17 }
  0x10   :  { %v1451_v45 = vpack.c.bf16 %v63_v43, %v62_v42  ;;  %v47_v47 = vld [vmem:[%s1672_s1 + $0x78] sm:$0xff]  ;;  %v1479_v54 = vld [vmem:[%s1674_s3] sm:$0xff]  ;;  %v1491_v55 = vld [vmem:[%s1674_s3 + $0x8] sm:$0xff] }
  0x11   :  { %1167 = vmatpush3.bf16.msra.mxu0 %v1394_v26  ;;  %v1460_v48 = vpack.c.bf16 %v47_v47, %v46_v46  ;;  %v1502_v56 = vld [vmem:[%s1674_s3 + $0x10] sm:$0xff]  ;;  %v65_v57 = vld [vmem:[%s1673_s2 + $0x8] sm:$0xff]  ;;  %v67_v58 = vld [vmem:[%s1673_s2 + $0x18] sm:$0xff]  ;;  %vm26_vm6 = vcmp.ge.s32.totalorder %v1571_v18, 1  ;;  %vm27_vm7 = vcmp.lt.s32.totalorder %v1571_v18, 10  ;;  %vm24_vm8 = vcmp.lt.s32.totalorder %v1571_v18, 1 }
  0x12   :  { %1169 = vmatprep.subr.bf16.mxu0 %v1397_v27  ;;  %v1513_v59 = vpack.c.bf16 %v67_v58, %v65_v57  ;;  %v64_v60 = vld [vmem:[%s1673_s2] sm:$0xff]  ;;  %v66_v61 = vld [vmem:[%s1673_s2 + $0x10] sm:$0xff]  ;;  %v69_v63 = vld [vmem:[%s1673_s2 + $0x28] sm:$0xff]  ;;  %vm29_vm10 = vcmp.ge.s32.totalorder %v1571_v18, 10  ;;  %vm30_vm11 = vcmp.lt.s32.totalorder %v1571_v18, 46 }
  0x13   :  { %v1521_v62 = vpack.c.bf16 %v66_v61, %v64_v60  ;;  %v71_v0 = vld [vmem:[%s1673_s2 + $0x38] sm:$0xff]  ;;  %v68_v2 = vld [vmem:[%s1673_s2 + $0x20] sm:$0xff]  ;;  %v70_v4 = vld [vmem:[%s1673_s2 + $0x30] sm:$0xff] }
  0x14   :  { %v1531_v1 = vpack.c.bf16 %v71_v0, %v69_v63  ;;  %v1539_v5 = vpack.c.bf16 %v70_v4, %v68_v2  ;;  %v73_v6 = vld [vmem:[%s1673_s2 + $0x48] sm:$0xff]  ;;  %v75_v9 = vld [vmem:[%s1673_s2 + $0x58] sm:$0x3f]  ;;  %v72_v11 = vld [vmem:[%s1673_s2 + $0x40] sm:$0xff] }
  0x15   :  { %1171 = vmatpush3.bf16.msra.mxu0 %v1412_v32  ;;  %v1549_v10 = vpack.c.bf16 %v75_v9, %v73_v6  ;;  %v74_v12 = vld [vmem:[%s1673_s2 + $0x50] sm:$0x3f]  ;;  %vm1557_vm5 = vmpackc.low %vm387_vm3, %vm1280_vm4  ;;  %v76_v40 = vld [vmem:[%s1675_s4] sm:$0xff] }
  0x16   :  { %1173 = vmatprep.subr.bf16.mxu0 %v1415_v33  ;;  %v1561_v16 = vpack.c.bf16 %v74_v12, %v72_v11  ;;  %vm1576_vm9 = vmand %vm26_vm6, %vm27_vm7  ;;  %v1027_v41 = vld [vmem:[%s1671_s0 + $0x18] sm:$0x1f] }
  0x17   :  { %vm1586_vm12 = vmand %vm29_vm10, %vm30_vm11 }
  0x19   :  { %1175 = vmatpush3.bf16.msra.mxu0 %v1430_v38 }
  0x1a   :  { %1177 = vmatprep.subr.bf16.mxu0 %v1433_v39 }
  0x1d   :  { %1179 = vmatpush3.bf16.msra.mxu0 %v1448_v44 }
  0x1e   :  { %1181 = vmatprep.subr.bf16.mxu0 %v1451_v45 }
  0x21   :  { %1183 = vmatpush3.bf16.msra.mxu0 %v1460_v48 }
  0x22   :  { %1137 = vmatprep.subr.mxu0 %v1278_v50 }
  0x24   :  { %149 = vmatmul.mubr.f32.vlgmr.msra.gmra.mrb[0].mxu0 %v1467_v49 }
  0x25   :  { %1139 = vmatprep.mubr.msk.f32.mxu0 %vm1279_vm0, %v1278_v50 }
  0xf7   :  { %v1072_v51 = vpop.f32.mrb[0].mxu0 }
  0xf8   :  { %v1073_v52 = vpop.f32.mrb[1].mxu0 }
  0xf9   :  { %v1074_v53 = vadd.f32 %v1073_v52, %v1072_v51 }
  0xfb   :  { %1123 = vmatpush3.msk.msra.mxu1 %vm158_vm1, %v1074_v53 }
  0xfc   :  { %1125 = vmatmul.mubr.msk.f32.vlgmr.msra.gmra.mrb[0].mxu1 %vm154_vm2, %v1479_v54  ;;  %1127 = vmatprep.subr.mxu1 %v1278_v50 }
  0xfd   :  { %1128 = vmatpush3.msk.msra.mxu1 %vm158_vm1, %v1074_v53  ;;  %1129 = vmatprep.mubr.msk.f32.mxu1 %vm1279_vm0, %v1278_v50 }
  0xfe   :  { %1132 = vmatprep.subr.mxu1 %v1278_v50 }
 0x100   :  { %1130 = vmatmul.mubr.msk.f32.vlgmr.msra.gmra.mrb[2].mxu1 %vm154_vm2, %v1491_v55 }
 0x101   :  { %1133 = vmatpush3.msk.msra.mxu1 %vm158_vm1, %v1074_v53  ;;  %1134 = vmatprep.mubr.msk.f32.mxu1 %vm1279_vm0, %v1278_v50 }
 0x102   :  { %1185 = vmatprep.subr.bf16.mxu1 %v1513_v59 }
 0x104   :  { %1135 = vmatmul.mubr.msk.f32.vlgmr.msra.gmra.mrb[4].mxu1 %vm154_vm2, %v1502_v56 }
 0x105   :  { %458 = vmatprep.mubr.f32.mxu1 %v1278_v50  ;;  %1187 = vmatpush1.bf16.msra.mxu1 %v1521_v62 }
 0x106   :  { %1189 = vmatprep.subr.bf16.mxu1 %v1531_v1 }
 0x109   :  { %1191 = vmatpush1.bf16.msra.mxu1 %v1539_v5 }
 0x10a   :  { %1194 = vmatprep.subr.msk.bf16.mxu1 %vm1557_vm5, %v1549_v10 }
 0x10d   :  { %1197 = vmatpush1.bf16.msk.msra.mxu1 %vm1557_vm5, %v1561_v16 }
 0x10e   :  { %1023 = vmatprep.subr.msk.mxu1 %vm158_vm1, %v1390_v25 }
 0x1cf   :  { %v228_v21 = vpop.f32.mrb[0].mxu1 }
 0x1d0   :  { %v1126_v22 = vpop.f32.mrb[1].mxu1  ;;  %v232_v25 = vsel %vm24_vm8, %v228_v21, 0.0 }
 0x1d3   :  { %v302_v24 = vpop.f32.mrb[2].mxu1 }
 0x1d4   :  { %v306_v28 = vsel %vm1576_vm9, %v302_v24, 0.0  ;;  %v1131_v29 = vpop.f32.mrb[3].mxu1 }
 0x1d5   :  { %v307_v30 = vadd.f32 %v306_v28, %v232_v25 }
 0x1d7   :  { %v377_v34 = vpop.f32.mrb[4].mxu1 }
 0x1d8   :  { %v381_v35 = vsel %vm1586_vm12, %v377_v34, 0.0  ;;  %v1136_v36 = vpop.f32.mrb[5].mxu1 }
 0x1d9   :  { %v382_v37 = vadd.f32 %v381_v35, %v307_v30 }
 0x1db   :  { %1022 = vmatmul.mubr.msk.f32.vlgmr.msra.gmra.mrb[6].mxu1 %vm383_vm13, %v382_v37 }
 0x1dc   :  { %1024 = vmatpush1.msk.msra.mxu1 %vm158_vm1, %v1467_v49  ;;  %538 = vmatprep.mubr.f32.mxu1 %v1278_v50 }
 0x1dd   :  { %1199 = vmatprep.subr.bf16.mxu1 %v1323_v3  ;;  %v1026_v3 = vld [vmem:[%s1671_s0 + $0x10] sm:$0x1f]  ;;  %s1281_s0 = smov [#allocation2]  }
 0x1de   :  { %s1001_s17 = sshll.u32 %s1281_s0, 4  ;;  %s1002_s17 = int_to_ptr.vmem [resolvable:$true] %s1001_s17 }
 0x1df   :  { %s1254_s18 = scalar_lea.vmem %s1002_s17, 512  ;;  %p1259_p1 = scmp.lt.s32.totalorder %s1002_s17, %s1002_s17 }
 0x1e0   :  { %p1255_p0 = scmp.ne.s32.totalorder %s1002_s17, %s1254_s18  ;;  %p1260_p2 = scmp.lt.s32.totalorder %s1254_s18, %s1254_s18 }
 0x1e2   :  { %p1261_p3 = por %p1260_p2, %p1259_p1 }
 0x1e3   :  { %1025 = vmatmul.mubr.msk.f32.vlgmr.msra.gmra.mrb[6].mxu1 %vm154_vm2, %v76_v40 }
 0x1e4   :  { %1201 = vmatpush3.bf16.msra.mxu1 %v1334_v7  ;;  %616 = vmatprep.mubr.f32.mxu1 %v1027_v41  ;;  %p1262_p4 = pnand %p1261_p3, %p1255_p0 }
 0x1e5   :  { %1203 = vmatprep.subr.bf16.mxu1 %v1336_v8 }
 0x1e8   :  { %1205 = vmatpush3.bf16.msra.mxu1 %v1352_v13 }
 0x1e9   :  { %1207 = vmatprep.subr.bf16.mxu1 %v1355_v14 }
 0x1ec   :  { %1209 = vmatpush3.bf16.msra.mxu1 %v1370_v19 }
 0x1ed   :  { %1211 = vmatprep.subr.bf16.mxu1 %v1373_v20 }
 0x1f0   :  { %1213 = vmatpush3.bf16.msra.mxu1 %v1394_v26 }
 0x1f1   :  { %1215 = vmatprep.subr.bf16.mxu1 %v1397_v27 }
 0x1f4   :  { %1217 = vmatpush3.bf16.msra.mxu1 %v1412_v32 }
 0x1f5   :  { %1219 = vmatprep.subr.bf16.mxu1 %v1415_v33 }
 0x1f8   :  { %1221 = vmatpush3.bf16.msra.mxu1 %v1430_v38 }
 0x1f9   :  { %1223 = vmatprep.subr.bf16.mxu1 %v1433_v39 }
 0x1fc   :  { %1225 = vmatpush3.bf16.msra.mxu1 %v1448_v44 }
 0x1fd   :  { %1227 = vmatprep.subr.bf16.mxu1 %v1451_v45 }
 0x200   :  { %1229 = vmatpush3.bf16.msra.mxu1 %v1460_v48 }
 0x203   :  { %617 = vmatmul.mubr.f32.vlgmr.msra.gmra.mrb[8].mxu1 %v1026_v3 }
 0x2b6   :  { %v540_v7 = vpop.f32.mrb[6].mxu1 }
 0x2b7   :  { %v545_v8 = vmax.f32 %v540_v7, 0.0  ;;  %v542_v13 = vpop.f32.mrb[7].mxu1 }
 0x2b8   :  { %v546_v14 = vmax.f32 %v542_v13, 0.0 }
 0x2b9   :  { %547 = vst [vmem:[#allocation2] sm:$0xff] %v545_v8 }
 0x2ba   :  { %548 = vst [vmem:[#allocation2 + $0x8] sm:$0xff] %v546_v14 }
 0x2d6   :  { %v1113_v19 = vpop.f32.mrb[8].mxu1 }
 0x2d7   :  { %v1114_v20 = vpop.f32.mrb[9].mxu1 }
 0x2d8   :  { %v1115_v26 = vadd.f32 %v1114_v20, %v1113_v19 }
 0x2da   :  { %1138 = vmatpush3.msk.msra.mxu0 %vm158_vm1, %v1115_v26 }
 0x2db   :  { %1140 = vmatmul.mubr.msk.f32.vlgmr.msra.gmra.mrb[2].mxu0 %vm154_vm2, %v1479_v54  ;;  %1142 = vmatprep.subr.mxu0 %v1278_v50 }
 0x2dc   :  { %1143 = vmatpush3.msk.msra.mxu0 %vm158_vm1, %v1115_v26  ;;  %1144 = vmatprep.mubr.msk.f32.mxu0 %vm1279_vm0, %v1278_v50 }
 0x2dd   :  { %1147 = vmatprep.subr.mxu0 %v1278_v50 }
 0x2df   :  { %1145 = vmatmul.mubr.msk.f32.vlgmr.msra.gmra.mrb[4].mxu0 %vm154_vm2, %v1491_v55 }
 0x2e0   :  { %1148 = vmatpush3.msk.msra.mxu0 %vm158_vm1, %v1115_v26  ;;  %1149 = vmatprep.mubr.msk.f32.mxu0 %vm1279_vm0, %v1278_v50 }
 0x2e1   :  { %1231 = vmatprep.subr.bf16.mxu0 %v1513_v59 }
 0x2e3   :  { %1150 = vmatmul.mubr.msk.f32.vlgmr.msra.gmra.mrb[6].mxu0 %vm154_vm2, %v1502_v56 }
 0x2e4   :  { %1233 = vmatpush1.bf16.msra.mxu0 %v1521_v62  ;;  %907 = vmatprep.mubr.f32.mxu0 %v1278_v50 }
 0x2e5   :  { %1235 = vmatprep.subr.bf16.mxu0 %v1531_v1 }
 0x2e8   :  { %1237 = vmatpush1.bf16.msra.mxu0 %v1539_v5 }
 0x2e9   :  { %1240 = vmatprep.subr.msk.bf16.mxu0 %vm1557_vm5, %v1549_v10 }
 0x2ec   :  { %1243 = vmatpush1.bf16.msk.msra.mxu0 %vm1557_vm5, %v1561_v16 }
 0x2ed   :  { %1037 = vmatprep.subr.msk.mxu0 %vm158_vm1, %v1027_v41 }
 0x3ae   :  { %v691_v27 = vpop.f32.mrb[2].mxu0 }
 0x3af   :  { %v1141_v32 = vpop.f32.mrb[3].mxu0  ;;  %v695_v38 = vsel %vm24_vm8, %v691_v27, 0.0 }
 0x3b2   :  { %v762_v33 = vpop.f32.mrb[4].mxu0 }
 0x3b3   :  { %v766_v39 = vsel %vm1576_vm9, %v762_v33, 0.0  ;;  %v1146_v42 = vpop.f32.mrb[5].mxu0 }
 0x3b4   :  { %v767_v43 = vadd.f32 %v766_v39, %v695_v38 }
 0x3b6   :  { %v834_v44 = vpop.f32.mrb[6].mxu0 }
 0x3b7   :  { %v838_v45 = vsel %vm1586_vm12, %v834_v44, 0.0  ;;  %v1151_v46 = vpop.f32.mrb[7].mxu0 }
 0x3b8   :  { %v839_v47 = vadd.f32 %v838_v45, %v767_v43 }
 0x3ba   :  { %1036 = vmatmul.mubr.msk.f32.vlgmr.msra.gmra.mrb[8].mxu0 %vm383_vm13, %v839_v47 }
 0x3bb   :  { %1038 = vmatpush1.msk.msra.mxu0 %vm158_vm1, %v1026_v3  ;;  %984 = vmatprep.mubr.f32.mxu0 %v1278_v50 }
 0x3c2   :  { %1039 = vmatmul.mubr.msk.f32.vlgmr.msra.gmra.mrb[8].mxu0 %vm154_vm2, %v76_v40 }
 0x495   :  { %v986_v48 = vpop.f32.mrb[8].mxu0 }
 0x496   :  { %v991_v49 = vmax.f32 %v986_v48, 0.0  ;;  %v988_v51 = vpop.f32.mrb[9].mxu0 }
 0x497   :  { %v992_v52 = vmax.f32 %v988_v51, 0.0 }
 0x498   :  { %994 = vst [vmem:[#allocation2 + $0x10] sm:$0xff] %v991_v49 }
 0x499   :  { %995 = vst [vmem:[#allocation2 + $0x18] sm:$0xff] %v992_v52 }
 0x49a   :  { %1265 = shalt.err (!%p1262_p4)
}
 0x49b   :  { %s1266_s21 = scalar_lea.hbm %s1676_s5, 512 }
 0x49c   :  { %p1267_p5 = scmp.ne.s32.totalorder %s1676_s5, %s1266_s21  ;;  %p1270_p6 = scmp.lt.u32.totalorder %s1266_s21, %s1676_s5 }
 0x49e   :  { %p1272_p7 = pnand %p1270_p6, %p1267_p5 }
 0x4a0   :  { %1275 = shalt.err (!%p1272_p7)
}
 0x4a1   :  { %s1282_s25 = smov 256   ;;  %s1283_s26 = smov 16  }
 0x4a2   :  { %1007 = dma.vmem_to_hbm [thread:$0]  %s1002_s17, 512, %s1676_s5, [#allocation3], %s1282_s25, %s1282_s25, %s1283_s26  }
 0x4a3   :  { %1276 = dma.done.wait [#allocation3], 512  }
 0x4a4   :  { %1277 = vsyncadd [#allocation3], 4294966784 }
 0x4a5   :  { %1011 = vsyncpa [#allocation3], 1 }

</bundles_post_ra>
